<compile_context>
chip_gen: v7x
topology: tpu7x:2x2x1
jax: 0.10.0
libtpu: 0.0.40
codegen_flags: <defaults>
</compile_context>

<pallas_src>
import functools

import jax
import jax.numpy as jnp
from jax.experimental import pallas as pl
from jax.experimental.pallas import tpu as pltpu

LANE = 128


def _round_up(n, m):
    return ((n + m - 1) // m) * m


# ----------------------------------------------------------------------------
# Kernel body: pure elementwise, constants baked in at trace time.
# ----------------------------------------------------------------------------
def _general_relu_kernel(x_ref, o_ref, *, leak, sub, maxv):
    x = x_ref[...]
    if leak is not None:
        # F.leaky_relu(x, leak)
        y = jnp.where(x >= 0, x, x * jnp.asarray(leak, x.dtype))
    else:
        # F.relu(x)
        y = jnp.maximum(x, jnp.zeros((), x.dtype))
    if sub is not None:
        y = y - jnp.asarray(sub, x.dtype)
    if maxv is not None:
        y = jnp.minimum(y, jnp.asarray(maxv, x.dtype))
    o_ref[...] = y


def _general_relu_jnp(x, leak=None, sub=None, maxv=None):
    """Pure-JAX GeneralRelu (fallback path + reference)."""
    if leak is not None:
        y = jnp.where(x >= 0, x, x * jnp.asarray(leak, x.dtype))
    else:
        y = jnp.maximum(x, jnp.zeros((), x.dtype))
    if sub is not None:
        y = y - jnp.asarray(sub, x.dtype)
    if maxv is not None:
        y = jnp.minimum(y, jnp.asarray(maxv, x.dtype))
    return y


# ----------------------------------------------------------------------------
# Generation-aware block sizing.
# ----------------------------------------------------------------------------
@functools.lru_cache(maxsize=1)
def _target_block_bytes():
    """Per-buffer block bytes. Peak VMEM ~= 4x this (in+out, double-buffered)."""
    try:
        kind = jax.devices()[0].device_kind.lower()
    except Exception:  # pragma: no cover - defensive
        kind = ""
    if "v7" in kind or "7x" in kind:
        # 64 MiB physical VMEM, 32 MiB scoped default, ~3.2 TB/s HBM per TC:
        # 4 MiB blocks (16 MiB peak) amortize the ~0.35 us/step overhead.
        return 4 << 20
    if "v6" in kind:
        # 128 MiB VMEM, 32 MiB scoped default: 4 MiB blocks -> 16 MiB peak.
        return 4 << 20
    if "v5" in kind:
        # v5e scoped default is only 16 MiB: cap at 2 MiB blocks (8 MiB peak);
        # ~90%+ of the ~820 GB/s roofline already at this size.
        return 2 << 20
    return 2 << 20  # safe default for unknown / older generations


def _pick_block_rows(rows, sub_gran, target_rows, min_steps=4):
    """Pick block rows: big blocks, but >= min_steps grid steps (prefer even)."""
    if rows <= min_steps * sub_gran:
        # Tiny slab: a single block equal to the full array is always layout-legal.
        return rows
    br = min(target_rows, _round_up(pl.cdiv(rows, min_steps), sub_gran))
    br = max(br, sub_gran)
    steps = pl.cdiv(rows, br)
    if steps > 1 and steps % 2 == 1:
        # Prefer an even step count so both v7x TensorCores get balanced work.
        br_even = max(sub_gran, _round_up(pl.cdiv(rows, steps + 1), sub_gran))
        if pl.cdiv(rows, br_even) % 2 == 0:
            br = br_even
    return br


# ----------------------------------------------------------------------------
# Public entry point.
# ----------------------------------------------------------------------------
def general_relu(x, leak=None, sub=None, maxv=None, *, min_pallas_bytes=256 << 10):
    """Apply GeneralRelu elementwise.

    leak/sub/maxv are optional Python scalars (compile-time constants mirroring
    the PyTorch module's __init__ args).

    Routing:
      * small inputs (< min_pallas_bytes) or element counts that are not a
        multiple of 128 -> pure jnp (single pass, XLA fuses it; no pad/slice
        extra HBM traffic, no kernel-launch overhead cliff).
      * everything else -> Pallas kernel over a lane-dense (rows, 128) slab
        with generation-aware block sizes.
    """
    orig_shape = x.shape
    dtype = x.dtype
    total = x.size
    if total == 0:
        return x

    itemsize = dtype.itemsize
    total_bytes = total * itemsize

    # Small or lane-unaligned inputs: plain jnp (fused by XLA, cheapest option).
    if total_bytes < min_pallas_bytes or total % LANE != 0:
        return _general_relu_jnp(x, leak=leak, sub=sub, maxv=maxv)

    # dtype-aware sublane granularity: 8 for f32, 16 for bf16/fp16, 32 for 8-bit.
    sub_gran = max(8, 32 // itemsize)

    # Flatten (free for a contiguous array) into a lane-dense (rows, 128) slab.
    rows = total // LANE
    slab = x.reshape(rows, LANE)

    # Generation-aware block size; grid uses cdiv, ragged last block is masked.
    target_rows = max(
        sub_gran,
        (_target_block_bytes() // (LANE * itemsize)) // sub_gran * sub_gran,
    )
    br = _pick_block_rows(rows, sub_gran, target_rows)
    grid = (pl.cdiv(rows, br),)

    kernel = functools.partial(_general_relu_kernel, leak=leak, sub=sub, maxv=maxv)

    out_slab = pl.pallas_call(
        kernel,
        out_shape=jax.ShapeDtypeStruct((rows, LANE), dtype),
        grid=grid,
        in_specs=[pl.BlockSpec((br, LANE), lambda i: (i, 0))],
        out_specs=pl.BlockSpec((br, LANE), lambda i: (i, 0)),
        compiler_params=pltpu.CompilerParams(dimension_semantics=("parallel",)),
        cost_estimate=pl.CostEstimate(
            flops=3 * total, transcendentals=0, bytes_accessed=2 * total_bytes
        ),
    )(slab)

    return out_slab.reshape(orig_shape)


def self_initializable_forward(module_fn, x, sub=0.0, leak=None, maxv=None):
    """SelfInitializableModule.forward: GeneralRelu(sub=sub, **kwargs)(module(x))."""
    # TODO(synk): the wrapped `module` is an arbitrary nn.Module (Conv/Linear/...);
    # it is applied here as a plain JAX callable.  If module_fn were itself a
    # Pallas matmul/conv kernel, the biggest win would be applying leak/sub/maxv
    # in its output-store epilogue instead of a separate pass over HBM.
    y = module_fn(x)
    return general_relu(y, leak=leak, sub=sub, maxv=maxv)


# ----------------------------------------------------------------------------
# Self-test.
# ----------------------------------------------------------------------------
if __name__ == "__main__":
    key = jax.random.PRNGKey(0)
    k1, k2, k3, k4, k5 = jax.random.split(key, 5)

    leak, sub, maxv = 0.1, 0.4, 6.0

    # 1) Small NCHW activation, forced through the Pallas path.
    x = jax.random.normal(k1, (2, 4, 16, 16), dtype=jnp.float32) * 2.0
    out = jax.block_until_ready(
        general_relu(x, leak=leak, sub=sub, maxv=maxv, min_pallas_bytes=0)
    )
    assert out.shape == x.shape and out.dtype == x.dtype
    assert jnp.allclose(
        out, _general_relu_jnp(x, leak=leak, sub=sub, maxv=maxv), atol=1e-6, rtol=1e-6
    )

    # 2) Defaults path (plain ReLU, no sub/maxv), Pallas path.
    out2 = jax.block_until_ready(general_relu(x, min_pallas_bytes=0))
    assert jnp.allclose(out2, _general_relu_jnp(x), atol=1e-6, rtol=1e-6)

    # 3) Ragged row grid (rows=40 -> blocks of 16 with a masked tail), Pallas path.
    x3 = jax.random.normal(k2, (2, 4, 20, 32), dtype=jnp.float32)
    out3 = jax.block_until_ready(general_relu(x3, sub=0.25, min_pallas_bytes=0))
    assert jnp.allclose(out3, _general_relu_jnp(x3, sub=0.25), atol=1e-6, rtol=1e-6)

    # 4) Non-lane-aligned element count (945) -> fused pure-jnp path (no pad/slice).
    x4 = jax.random.normal(k3, (3, 5, 9, 7), dtype=jnp.float32)
    out4 = jax.block_until_ready(general_relu(x4, leak=0.2, maxv=1.0))
    assert jnp.allclose(
        out4, _general_relu_jnp(x4, leak=0.2, maxv=1.0), atol=1e-6, rtol=1e-6
    )

    # 5) bf16 Pallas path (dtype-aware sublane granularity = 16).
    x_bf = x.astype(jnp.bfloat16)
    out_bf = jax.block_until_ready(
        general_relu(x_bf, leak=leak, sub=sub, maxv=maxv, min_pallas_bytes=0)
    )
    assert out_bf.dtype == jnp.bfloat16
    assert jnp.allclose(
        out_bf.astype(jnp.float32),
        _general_relu_jnp(x_bf, leak=leak, sub=sub, maxv=maxv).astype(jnp.float32),
        atol=1e-2,
        rtol=1e-2,
    )

    # 6) Default routing on a larger activation -> Pallas kernel, generation-aware
    #    blocks, >= 4 (even) grid steps.
    x6 = jax.random.normal(k5, (8, 16, 32, 32), dtype=jnp.float32)
    out6 = jax.block_until_ready(general_relu(x6, leak=leak, sub=sub, maxv=maxv))
    assert jnp.allclose(
        out6, _general_relu_jnp(x6, leak=leak, sub=sub, maxv=maxv), atol=1e-6, rtol=1e-6
    )

    # 7) Full SelfInitializableModule forward: GeneralRelu(sub=0.4)(linear(x)).
    w = jax.random.normal(k4, (32, 32), dtype=jnp.float32) * 0.1
    xs = jax.random.normal(k1, (2, 8, 32), dtype=jnp.float32)
    module_fn = lambda t: t @ w
    out7 = jax.block_until_ready(self_initializable_forward(module_fn, xs, sub=0.4))
    ref7 = _general_relu_jnp(module_fn(xs), sub=0.4)
    assert jnp.allclose(out7, ref7, atol=1e-5, rtol=1e-5)

    print("KERNEL_OK")
</pallas_src>

<mosaic_0001>
module attributes {stable_mosaic.version = 11 : i64} {
  func.func @_general_relu_kernel(%arg0: i32, %arg1: memref<16x128xf32, #tpu.memory_space<vmem>>, %arg2: memref<16x128xf32, #tpu.memory_space<vmem>>) attributes {dimension_semantics = [#tpu.dimension_semantics<parallel>], iteration_bounds = array<i64: 1>, scalar_prefetch = 0 : i64, scratch_operands = 0 : i64, tpu.core_type = #tpu.core_type<tc>, window_params = [{transform_indices = @transform_0, window_bounds = array<i64: 16, 128>}, {transform_indices = @transform_1, window_bounds = array<i64: 16, 128>}]} {
    %c0 = arith.constant 0 : index
    %c0_0 = arith.constant 0 : index
    %0 = vector.load %arg1[%c0, %c0_0] : memref<16x128xf32, #tpu.memory_space<vmem>>, vector<16x128xf32>
    %cst = arith.constant 0.000000e+00 : f32
    %1 = vector.broadcast %cst : f32 to vector<16x128xf32>
    %2 = arith.cmpf oge, %0, %1 : vector<16x128xf32>
    %cst_1 = arith.constant 1.000000e-01 : f32
    %3 = vector.broadcast %cst_1 : f32 to vector<16x128xf32>
    %4 = arith.mulf %0, %3 : vector<16x128xf32>
    %5 = arith.select %2, %0, %4 : vector<16x128xi1>, vector<16x128xf32>
    %cst_2 = arith.constant 4.000000e-01 : f32
    %6 = vector.broadcast %cst_2 : f32 to vector<16x128xf32>
    %7 = arith.subf %5, %6 : vector<16x128xf32>
    %cst_3 = arith.constant 6.000000e+00 : f32
    %8 = vector.broadcast %cst_3 : f32 to vector<16x128xf32>
    %9 = arith.minimumf %7, %8 : vector<16x128xf32>
    %c0_4 = arith.constant 0 : index
    %c0_5 = arith.constant 0 : index
    %10 = vector.load %arg2[%c0_4, %c0_5] : memref<16x128xf32, #tpu.memory_space<vmem>>, vector<16x128xf32>
    tpu.vector_store %arg2[%c0_4, %c0_5], %9 {strides = array<i32>} : memref<16x128xf32, #tpu.memory_space<vmem>>, vector<16x128xf32>,
    return
  }
  func.func @transform_0(%arg0: i32) -> (i32, i32) {
    %c0_i32 = arith.constant 0 : i32
    %c0_i32_0 = arith.constant 0 : i32
    return %arg0, %c0_i32 : i32, i32
  }
  func.func @transform_1(%arg0: i32) -> (i32, i32) {
    %c0_i32 = arith.constant 0 : i32
    %c0_i32_0 = arith.constant 0 : i32
    return %arg0, %c0_i32 : i32, i32
  }
}

</mosaic_0001>

<bundles_post_ra>
// kernel: tpu_custom_call.1
= control target key start
LH: loop header
LB: loop body
LE: loop exit
PB: predicated region body
PF: predicated region fallthrough
CT: control target
= control target key end

     0   :  { %6 = vsyncpa [#allocation3], 0  ;;  %s152_s0 = inlined_call_operand.hbm [shape: f32[16,128], index: 0, kind: input, shape index: {}]   ;;  %s153_s1 = inlined_call_operand.hbm [shape: f32[16,128], index: 1, kind: output, shape index: {}]  }
   0x1   :  { %7 = vsyncpa [#allocation4], 0  ;;  %s108_s6 = smov [#allocation2]   ;;  %s60_s10 = scalar_lea.hbm %s152_s0, 256 }
   0x2   :  { %s13_s7 = sshll.u32 %s108_s6, 4  ;;  %p61_p0 = scmp.ne.s32.totalorder %s152_s0, %s60_s10  ;;  %s14_s7 = int_to_ptr.vmem [resolvable:$true] %s13_s7 }
   0x3   :  { %p64_p1 = scmp.lt.u32.totalorder %s60_s10, %s152_s0 }
   0x5   :  { %p66_p2 = pnand %p64_p1, %p61_p0 }
   0x7   :  { %69 = shalt.err (!%p66_p2)
}
   0x8   :  { %s70_s15 = scalar_lea.vmem %s14_s7, 256  ;;  %p75_p4 = scmp.lt.s32.totalorder %s14_s7, %s14_s7 }
   0x9   :  { %p71_p3 = scmp.ne.s32.totalorder %s14_s7, %s70_s15  ;;  %p76_p5 = scmp.lt.s32.totalorder %s70_s15, %s70_s15 }
   0xb   :  { %p77_p6 = por %p76_p5, %p75_p4 }
   0xd   :  { %p78_p7 = pnand %p77_p6, %p71_p3 }
   0xf   :  { %81 = shalt.err (!%p78_p7)
}
  0x10   :  { %s109_s16 = smov 128   ;;  %s110_s17 = smov 8  }
  0x11   :  { %19 = dma.hbm_to_vmem [thread:$0]  %s152_s0, 256, %s14_s7, [#allocation3], %s109_s16, %s109_s16, %s110_s17  }
  0x12   :  { %104 = dma.done.wait [#allocation3], 256  }
  0x13   :  { %105 = vsyncadd [#allocation3], 4294967040  ;;  %v23_v0 = vld [vmem:[#allocation2] sm:$0xff]  ;;  %v24_v1 = vld [vmem:[#allocation2 + $0x8] sm:$0xff]  ;;  %s111_s20 = smov [#allocation5]  }
  0x14   :  { %vm25_vm0 = vcmp.ge.f32.partialorder %v23_v0, 0.0  ;;  %v27_v2 = vmul.f32 0.1, %v23_v0  ;;  %vm26_vm1 = vcmp.ge.f32.partialorder %v24_v1, 0.0  ;;  %v28_v3 = vmul.f32 0.1, %v24_v1 }
  0x15   :  { %s42_s21 = sshll.u32 %s111_s20, 4  ;;  %s43_s21 = int_to_ptr.vmem [resolvable:$true] %s42_s21 }
  0x16   :  { %v29_v4 = vsel %vm25_vm0, %v23_v0, %v27_v2  ;;  %v30_v5 = vsel %vm26_vm1, %v24_v1, %v28_v3  ;;  %s82_s0 = scalar_lea.vmem %s43_s21, 256  ;;  %p87_p9 = scmp.lt.s32.totalorder %s43_s21, %s43_s21 }
  0x17   :  { %v54_v6 = vadd.f32 -0.4, %v29_v4  ;;  %v55_v7 = vadd.f32 -0.4, %v30_v5  ;;  %p83_p8 = scmp.ne.s32.totalorder %s43_s21, %s82_s0  ;;  %p88_p10 = scmp.lt.s32.totalorder %s82_s0, %s82_s0 }
  0x19   :  { %v33_v8 = vmin.f32 %v54_v6, 6.0  ;;  %v34_v9 = vmin.f32 %v55_v7, 6.0  ;;  %p89_p11 = por %p88_p10, %p87_p9 }
  0x1b   :  { %35 = vst [vmem:[#allocation5] sm:$0xff] %v33_v8  ;;  %36 = vst [vmem:[#allocation5 + $0x8] sm:$0xff] %v34_v9  ;;  %p90_p12 = pnand %p89_p11, %p83_p8 }
  0x1d   :  { %93 = shalt.err (!%p90_p12)
}
  0x1e   :  { %s94_s24 = scalar_lea.hbm %s153_s1, 256 }
  0x1f   :  { %p95_p13 = scmp.ne.s32.totalorder %s153_s1, %s94_s24  ;;  %p98_p0 = scmp.lt.u32.totalorder %s94_s24, %s153_s1 }
  0x21   :  { %p100_p1 = pnand %p98_p0, %p95_p13 }
  0x23   :  { %103 = shalt.err (!%p100_p1)
}
  0x24   :  { %48 = dma.vmem_to_hbm [thread:$0]  %s43_s21, 256, %s153_s1, [#allocation4], %s109_s16, %s109_s16, %s110_s17  }
  0x25   :  { %106 = dma.done.wait [#allocation4], 256  }
  0x26   :  { %107 = vsyncadd [#allocation4], 4294967040 }
  0x27   :  { %52 = vsyncpa [#allocation3], 1 }
  0x28   :  { %53 = vsyncpa [#allocation4], 1 }

</bundles_post_ra>
